<compile_context>
chip_gen: v7x
topology: tpu7x:2x2x1
jax: 0.10.0
libtpu: 0.0.40
codegen_flags: <defaults>
</compile_context>

<pallas_src>
import functools

import jax
import jax.numpy as jnp
from jax.experimental import pallas as pl
from jax.experimental.pallas import tpu as pltpu


def _round_up(a: int, b: int) -> int:
    return ((a + b - 1) // b) * b


def _cdiv(a: int, b: int) -> int:
    return (a + b - 1) // b


# --------------------------- fused Pallas kernel ----------------------------

def _gru_fusion_kernel(k_ref, x_ref, w_in_ref, b_in_ref, w_hh_ref, b_hh_ref,
                       o_ref, state_ref, *, d_model: int):
    """One (node_tile, source) grid step.

    k_ref    : (tile_n, d_k_max)       knowledge features of source s (padded)
    x_ref    : (tile_n, d)             initial node state (read only at s == 0)
    w_in_ref : (S, d_k_max, 3*d)       resident folded input-side weights [r|z|n]
    b_in_ref : (S, 1, 3*d) f32         resident folded input-side biases
    w_hh_ref : (S, d, 3*d)             resident hidden-side weights       [r|z|n]
    b_hh_ref : (S, 1, 3*d) f32         resident hidden-side biases
    o_ref    : (tile_n, d)             fused node state (written at last source)
    state_ref: (tile_n, d) f32         VMEM-resident state carried across sources
    """
    d = d_model
    s = pl.program_id(1)

    @pl.when(s == 0)
    def _():
        state_ref[...] = x_ref[...].astype(jnp.float32)

    x = state_ref[...]                                    # carried f32 state

    # Weights live in VMEM for the whole kernel (constant block index); pick
    # the current source with a dynamic leading-axis index.
    w_in = w_in_ref[s]                                    # (d_k_max, 3d)
    b_in = b_in_ref[s]                                    # (1, 3d)
    w_hh = w_hh_ref[s]                                    # (d, 3d)
    b_hh = b_hh_ref[s]                                    # (1, 3d)

    # One wide matmul per side (gates packed as [r | z | n] along lanes).
    gates_in = jnp.dot(k_ref[...], w_in,
                       preferred_element_type=jnp.float32) + b_in
    gates_h = jnp.dot(x.astype(w_hh.dtype), w_hh,
                      preferred_element_type=jnp.float32) + b_hh

    r = jax.nn.sigmoid(gates_in[:, 0 * d:1 * d] + gates_h[:, 0 * d:1 * d])
    z = jax.nn.sigmoid(gates_in[:, 1 * d:2 * d] + gates_h[:, 1 * d:2 * d])
    n = jnp.tanh(gates_in[:, 2 * d:3 * d] + r * gates_h[:, 2 * d:3 * d])

    new_x = (1.0 - z) * n + z * x
    state_ref[...] = new_x

    @pl.when(s == pl.num_programs(1) - 1)
    def _():
        o_ref[...] = new_x.astype(o_ref.dtype)


# ------------------------- host-side parameter packing ----------------------

def _pack_params(all_params, knode_names, d_model, matmul_dtype):
    """Fold the knowledge projection into packed input-side gate weights.

    Per-source PyTorch layout in `all_params[name]`:
      w_proj (d, d_k), b_proj (d,), w_ih (3d, d), b_ih (3d,),
      w_hh (3d, d),    b_hh (3d,)           (gate order r, z, n)

    Returns stacked, padded, packed tensors:
      W_in_all (S, d_k_max, 3d), b_in_all (S, 1, 3d),
      W_hh_all (S, d, 3d),       b_hh_all (S, 1, 3d), d_k_max

    NOTE: hoist this call (and the k pad/stack in gru_fusion) out of the hot
    path when the same parameters are reused across many calls.
    """
    d_k_max = max(all_params[name]["w_proj"].shape[1] for name in knode_names)
    w_in, b_in, w_hh, b_hh = [], [], [], []
    for name in knode_names:
        p = all_params[name]
        wih_packed = p["w_ih"].T.astype(jnp.float32)                 # (d, 3d)
        whh_packed = p["w_hh"].T.astype(jnp.float32)                 # (d, 3d)
        # Fold Linear(d_k -> d) into input-side gate weights (exact algebra).
        w_in_s = p["w_proj"].T.astype(jnp.float32) @ wih_packed      # (d_k, 3d)
        b_in_s = p["b_proj"].astype(jnp.float32) @ wih_packed + p["b_ih"]
        d_k = w_in_s.shape[0]
        w_in.append(jnp.pad(w_in_s, ((0, d_k_max - d_k), (0, 0))))
        b_in.append(b_in_s[None, :])
        w_hh.append(whh_packed)
        b_hh.append(p["b_hh"].astype(jnp.float32)[None, :])
    return (jnp.stack(w_in).astype(matmul_dtype),
            jnp.stack(b_in).astype(jnp.float32),
            jnp.stack(w_hh).astype(matmul_dtype),
            jnp.stack(b_hh).astype(jnp.float32),
            d_k_max)


# ------------------------- tiling / VMEM budgeting ---------------------------

_VMEM_SOFT_BUDGET = 48 << 20   # conservative: headroom under v7x's 64 MiB / TC


def _vmem_footprint(tile_n, d, d_k_max, num_sources, w_bytes, k_buffers):
    """Approximate VMEM bytes used by the kernel for a given node tile."""
    kb = k_buffers * tile_n * d_k_max * w_bytes              # pipelined k stream
    xb = 2 * tile_n * d * 4                                  # x0 block (f32)
    ob = 2 * tile_n * d * 4                                  # out block (f32)
    st = tile_n * d * 4                                      # f32 state scratch
    wts = 2 * num_sources * (d_k_max + d) * 3 * d * w_bytes  # resident weights
    bts = 2 * num_sources * 2 * 3 * d * 4                    # resident biases
    return kb + xb + ob + st + wts + bts


def _choose_tile_n(n_nodes, requested, d, d_k_max, num_sources, w_bytes,
                   k_buffers, granule=128):
    """Node-tile size: multiple of 128 (MXU-M / lane / bf16 sublane granule),
    >= 2 tiles whenever the node count allows it (v7x has 2 TensorCores and the
    parallel node axis is what shards across them), shrunk until the VMEM
    footprint fits the conservative budget."""
    tile_n = _round_up(min(max(requested, granule), max(n_nodes, 1)), granule)
    if tile_n >= n_nodes and n_nodes > granule:
        tile_n = _round_up(_cdiv(n_nodes, 2), granule)
    # Balance padding waste across tiles.
    n_tiles = _cdiv(n_nodes, tile_n)
    tile_n = _round_up(_cdiv(n_nodes, n_tiles), granule)
    while tile_n > granule and _vmem_footprint(
            tile_n, d, d_k_max, num_sources, w_bytes,
            k_buffers) > _VMEM_SOFT_BUDGET:
        tile_n = max(granule, _round_up(tile_n // 2, granule))
    return tile_n


# -------------------------------- wrapper ------------------------------------

def gru_fusion(bg, x, knodes, all_params, knode_names, *,
               tile_n=512, matmul_dtype=jnp.bfloat16, k_buffers=2,
               vmem_limit_bytes=None):
    """GRUFusion.forward: sequentially fuse each knowledge source into x,
    all inside one pallas_call (x stays resident in VMEM across sources)."""
    del bg  # see TODO(synk) at top of file

    n_nodes, d = x.shape
    num_sources = len(knode_names)
    assert num_sources >= 1

    w_in_all, b_in_all, w_hh_all, b_hh_all, d_k_max = _pack_params(
        all_params, knode_names, d, matmul_dtype)

    w_bytes = jnp.dtype(matmul_dtype).itemsize
    tile_n = _choose_tile_n(n_nodes, tile_n, d, d_k_max, num_sources,
                            w_bytes, k_buffers)
    n_pad = _round_up(n_nodes, tile_n)
    n_tiles = n_pad // tile_n

    if vmem_limit_bytes is None:
        fp = _vmem_footprint(tile_n, d, d_k_max, num_sources, w_bytes,
                             k_buffers)
        vmem_limit_bytes = int(min(1.25 * fp + (4 << 20), 128 << 20))

    x_p = jnp.pad(x.astype(jnp.float32), ((0, n_pad - n_nodes), (0, 0)))
    # Cast to matmul dtype BEFORE padding/stacking: halves the wrapper-side
    # copy of the dominant k stream.
    k_all = jnp.stack([
        jnp.pad(knodes[name].astype(matmul_dtype),
                ((0, n_pad - n_nodes), (0, d_k_max - knodes[name].shape[1])))
        for name in knode_names
    ])                                                    # (S, n_pad, d_k_max)

    k_spec_kwargs = {}
    if k_buffers != 2:   # only override the default pipelining depth if asked
        k_spec_kwargs["pipeline_mode"] = pl.Buffered(k_buffers)

    grid_spec = pltpu.PrefetchScalarGridSpec(
        num_scalar_prefetch=0,
        # node tiles: outer / parallel (megacore); sources: inner / sequential.
        grid=(n_tiles, num_sources),
        in_specs=[
            # per-(tile, source) knowledge stream
            pl.BlockSpec((None, tile_n, d_k_max), lambda i, s: (s, i, 0),
                         **k_spec_kwargs),
            # initial state: fetched once per node tile
            pl.BlockSpec((tile_n, d), lambda i, s: (i, 0)),
            # packed weights / biases: constant block index over the full
            # arrays -> fetched once, VMEM-resident for the whole kernel.
            pl.BlockSpec((num_sources, d_k_max, 3 * d), lambda i, s: (0, 0, 0)),
            pl.BlockSpec((num_sources, 1, 3 * d), lambda i, s: (0, 0, 0)),
            pl.BlockSpec((num_sources, d, 3 * d), lambda i, s: (0, 0, 0)),
            pl.BlockSpec((num_sources, 1, 3 * d), lambda i, s: (0, 0, 0)),
        ],
        out_specs=pl.BlockSpec((tile_n, d), lambda i, s: (i, 0)),
        scratch_shapes=[pltpu.VMEM((tile_n, d), jnp.float32)],
    )

    out = pl.pallas_call(
        functools.partial(_gru_fusion_kernel, d_model=d),
        out_shape=jax.ShapeDtypeStruct((n_pad, d), jnp.float32),
        grid_spec=grid_spec,
        # Padded initial state and padded output share one HBM buffer: x is
        # read only at s==0 per tile, the output written only at the last s.
        input_output_aliases={1: 0},
        compiler_params=pltpu.CompilerParams(
            dimension_semantics=("parallel", "arbitrary"),
            vmem_limit_bytes=vmem_limit_bytes),
    )(k_all, x_p, w_in_all, b_in_all, w_hh_all, b_hh_all)

    return out[:n_nodes].astype(x.dtype)


# ----------------------- pure-JAX reference (f32, unfused) -------------------

def _ref_knowledge_fusion(x, k, p):
    d = x.shape[1]
    kp = k @ p["w_proj"].T + p["b_proj"]
    gi = kp @ p["w_ih"].T + p["b_ih"]
    gh = x @ p["w_hh"].T + p["b_hh"]
    r = jax.nn.sigmoid(gi[:, :d] + gh[:, :d])
    z = jax.nn.sigmoid(gi[:, d:2 * d] + gh[:, d:2 * d])
    n = jnp.tanh(gi[:, 2 * d:] + r * gh[:, 2 * d:])
    return (1.0 - z) * n + z * x


def _ref_gru_fusion(x, knodes, all_params, knode_names):
    for fp_name in knode_names:
        x = _ref_knowledge_fusion(x, knodes[fp_name], all_params[fp_name])
    return x


# ----------------------------------- driver ----------------------------------

def _init_params(key, d_model, fp_dims):
    """Deterministic synthetic params in PyTorch GRUCell / Linear layout."""
    all_params = {}
    scale = 0.1
    for fp_name, d_k in fp_dims.items():
        key, *sub = jax.random.split(key, 7)
        all_params[fp_name] = {
            "w_proj": scale * jax.random.normal(sub[0], (d_model, d_k), jnp.float32),
            "b_proj": scale * jax.random.normal(sub[1], (d_model,), jnp.float32),
            "w_ih":   scale * jax.random.normal(sub[2], (3 * d_model, d_model), jnp.float32),
            "b_ih":   scale * jax.random.normal(sub[3], (3 * d_model,), jnp.float32),
            "w_hh":   scale * jax.random.normal(sub[4], (3 * d_model, d_model), jnp.float32),
            "b_hh":   scale * jax.random.normal(sub[5], (3 * d_model,), jnp.float32),
        }
    return all_params


if __name__ == "__main__":
    d_model = 32
    n_nodes = 64
    knode_names = ["ecfp", "maccs"]          # two knowledge sources
    fp_dims = {"ecfp": 64, "maccs": 32}      # per-source knowledge feature dims

    key = jax.random.PRNGKey(0)
    kx, kecfp, kmaccs, kparams = jax.random.split(key, 4)

    x = jax.random.normal(kx, (n_nodes, d_model), jnp.float32)
    knodes = {
        "ecfp":  jax.random.normal(kecfp, (n_nodes, fp_dims["ecfp"]), jnp.float32),
        "maccs": jax.random.normal(kmaccs, (n_nodes, fp_dims["maccs"]), jnp.float32),
    }
    all_params = _init_params(kparams, d_model, fp_dims)

    bg = None  # graph object is unused (knowledge features already per-node)

    out = gru_fusion(bg, x, knodes, all_params, knode_names)
    out = jax.block_until_ready(out)

    ref = _ref_gru_fusion(x, knodes, all_params, knode_names)
    assert out.shape == (n_nodes, d_model)
    # bf16 MXU operands with f32 accumulation: small, bounded deviation vs the
    # exact-f32 reference is expected.
    err = float(jnp.max(jnp.abs(out - ref)))
    assert err < 3e-2, f"mismatch vs pure-JAX reference: {err}"

    print("KERNEL_OK")
</pallas_src>

<mosaic_0001>
module attributes {stable_mosaic.version = 11 : i64} {
  func.func @_gru_fusion_kernel(%arg0: i32, %arg1: i32, %arg2: memref<1x128x64xbf16, #tpu.memory_space<vmem>>, %arg3: memref<128x32xf32, #tpu.memory_space<vmem>>, %arg4: memref<2x64x96xbf16, #tpu.memory_space<vmem>>, %arg5: memref<2x1x96xf32, #tpu.memory_space<vmem>>, %arg6: memref<2x32x96xbf16, #tpu.memory_space<vmem>>, %arg7: memref<2x1x96xf32, #tpu.memory_space<vmem>>, %arg8: memref<128x32xf32, #tpu.memory_space<vmem>>, %arg9: memref<128x32xf32, #tpu.memory_space<vmem>>) attributes {dimension_semantics = [#tpu.dimension_semantics<parallel>, #tpu.dimension_semantics<arbitrary>], iteration_bounds = array<i64: 1, 2>, scalar_prefetch = 0 : i64, scratch_operands = 1 : i64, tpu.core_type = #tpu.core_type<tc>, window_params = [{transform_indices = @transform_0, window_bounds = array<i64: 1, 128, 64>}, {transform_indices = @transform_1, window_bounds = array<i64: 128, 32>}, {pipeline_mode = #tpu.pipeline_mode<synchronous>, transform_indices = @transform_2, window_bounds = array<i64: 2, 64, 96>}, {pipeline_mode = #tpu.pipeline_mode<synchronous>, transform_indices = @transform_3, window_bounds = array<i64: 2, 1, 96>}, {pipeline_mode = #tpu.pipeline_mode<synchronous>, transform_indices = @transform_4, window_bounds = array<i64: 2, 32, 96>}, {pipeline_mode = #tpu.pipeline_mode<synchronous>, transform_indices = @transform_5, window_bounds = array<i64: 2, 1, 96>}, {transform_indices = @transform_6, window_bounds = array<i64: 128, 32>}]} {
    %c0_i32 = arith.constant 0 : i32
    %0 = arith.cmpi eq, %arg1, %c0_i32 : i32
    %1 = arith.extui %0 : i1 to i32
    %c0_i32_0 = arith.constant 0 : i32
    %2 = arith.cmpi ne, %1, %c0_i32_0 : i32
    scf.if %2 {
      %c0_20 = arith.constant 0 : index
      %c0_21 = arith.constant 0 : index
      %55 = vector.load %arg3[%c0_20, %c0_21] : memref<128x32xf32, #tpu.memory_space<vmem>>, vector<128x32xf32>
      %c0_22 = arith.constant 0 : index
      %c0_23 = arith.constant 0 : index
      %56 = vector.load %arg9[%c0_22, %c0_23] : memref<128x32xf32, #tpu.memory_space<vmem>>, vector<128x32xf32>
      tpu.vector_store %arg9[%c0_22, %c0_23], %55 {strides = array<i32>} : memref<128x32xf32, #tpu.memory_space<vmem>>, vector<128x32xf32>,
    } else {
    }
    %c0 = arith.constant 0 : index
    %c0_1 = arith.constant 0 : index
    %3 = vector.load %arg9[%c0, %c0_1] : memref<128x32xf32, #tpu.memory_space<vmem>>, vector<128x32xf32>
    %4 = arith.index_cast %arg1 : i32 to index
    %c0_2 = arith.constant 0 : index
    %c0_3 = arith.constant 0 : index
    %5 = vector.load %arg4[%4, %c0_2, %c0_3] : memref<2x64x96xbf16, #tpu.memory_space<vmem>>, vector<1x64x96xbf16>
    %6 = vector.shape_cast %5 : vector<1x64x96xbf16> to vector<64x96xbf16>
    %7 = arith.index_cast %arg1 : i32 to index
    %c0_4 = arith.constant 0 : index
    %c0_5 = arith.constant 0 : index
    %8 = vector.load %arg5[%7, %c0_4, %c0_5] : memref<2x1x96xf32, #tpu.memory_space<vmem>>, vector<1x1x96xf32>
    %9 = vector.shape_cast %8 : vector<1x1x96xf32> to vector<1x96xf32>
    %10 = arith.index_cast %arg1 : i32 to index
    %c0_6 = arith.constant 0 : index
    %c0_7 = arith.constant 0 : index
    %11 = vector.load %arg6[%10, %c0_6, %c0_7] : memref<2x32x96xbf16, #tpu.memory_space<vmem>>, vector<1x32x96xbf16>
    %12 = vector.shape_cast %11 : vector<1x32x96xbf16> to vector<32x96xbf16>
    %13 = arith.index_cast %arg1 : i32 to index
    %c0_8 = arith.constant 0 : index
    %c0_9 = arith.constant 0 : index
    %14 = vector.load %arg7[%13, %c0_8, %c0_9] : memref<2x1x96xf32, #tpu.memory_space<vmem>>, vector<1x1x96xf32>
    %15 = vector.shape_cast %14 : vector<1x1x96xf32> to vector<1x96xf32>
    %c0_10 = arith.constant 0 : index
    %c0_11 = arith.constant 0 : index
    %c0_12 = arith.constant 0 : index
    %16 = vector.load %arg2[%c0_10, %c0_11, %c0_12] : memref<1x128x64xbf16, #tpu.memory_space<vmem>>, vector<1x128x64xbf16>
    %17 = vector.shape_cast %16 : vector<1x128x64xbf16> to vector<128x64xbf16>
    %cst = arith.constant dense<0.000000e+00> : vector<128x96xf32>
    %18 = tpu.matmul %17, %6, %cst {dimension_numbers = #tpu.dot_dimension_numbers<[1], [0], [0], [1], [0, 0, 1, 1], [], []>} : vector<128x64xbf16>, vector<64x96xbf16>, vector<128x96xf32> -> vector<128x96xf32>
    %19 = vector.broadcast %9 : vector<1x96xf32> to vector<128x96xf32>
    %20 = arith.addf %18, %19 : vector<128x96xf32>
    %21 = arith.truncf %3 : vector<128x32xf32> to vector<128x32xbf16>
    %cst_13 = arith.constant dense<0.000000e+00> : vector<128x96xf32>
    %22 = tpu.matmul %21, %12, %cst_13 {dimension_numbers = #tpu.dot_dimension_numbers<[1], [0], [0], [1], [0, 0, 1, 1], [], []>} : vector<128x32xbf16>, vector<32x96xbf16>, vector<128x96xf32> -> vector<128x96xf32>
    %23 = vector.broadcast %15 : vector<1x96xf32> to vector<128x96xf32>
    %24 = arith.addf %22, %23 : vector<128x96xf32>
    %25 = vector.extract_strided_slice %20 {offsets = [0, 0], sizes = [128, 32], strides = [1, 1]} : vector<128x96xf32> to vector<128x32xf32>
    %26 = vector.extract_strided_slice %24 {offsets = [0, 0], sizes = [128, 32], strides = [1, 1]} : vector<128x96xf32> to vector<128x32xf32>
    %27 = arith.addf %25, %26 : vector<128x32xf32>
    %28 = arith.negf %27 : vector<128x32xf32>
    %29 = math.exp %28 : vector<128x32xf32>
    %cst_14 = arith.constant 1.000000e+00 : f32
    %30 = vector.broadcast %cst_14 : f32 to vector<128x32xf32>
    %31 = arith.addf %30, %29 : vector<128x32xf32>
    %32 = arith.divf %30, %31 : vector<128x32xf32>
    %33 = vector.extract_strided_slice %20 {offsets = [0, 32], sizes = [128, 32], strides = [1, 1]} : vector<128x96xf32> to vector<128x32xf32>
    %34 = vector.extract_strided_slice %24 {offsets = [0, 32], sizes = [128, 32], strides = [1, 1]} : vector<128x96xf32> to vector<128x32xf32>
    %35 = arith.addf %33, %34 : vector<128x32xf32>
    %36 = arith.negf %35 : vector<128x32xf32>
    %37 = math.exp %36 : vector<128x32xf32>
    %cst_15 = arith.constant 1.000000e+00 : f32
    %38 = vector.broadcast %cst_15 : f32 to vector<128x32xf32>
    %39 = arith.addf %38, %37 : vector<128x32xf32>
    %40 = arith.divf %38, %39 : vector<128x32xf32>
    %41 = vector.extract_strided_slice %20 {offsets = [0, 64], sizes = [128, 32], strides = [1, 1]} : vector<128x96xf32> to vector<128x32xf32>
    %42 = vector.extract_strided_slice %24 {offsets = [0, 64], sizes = [128, 32], strides = [1, 1]} : vector<128x96xf32> to vector<128x32xf32>
    %43 = arith.mulf %32, %42 : vector<128x32xf32>
    %44 = arith.addf %41, %43 : vector<128x32xf32>
    %45 = math.tanh %44 : vector<128x32xf32>
    %cst_16 = arith.constant 1.000000e+00 : f32
    %46 = vector.broadcast %cst_16 : f32 to vector<128x32xf32>
    %47 = arith.subf %46, %40 : vector<128x32xf32>
    %48 = arith.mulf %47, %45 : vector<128x32xf32>
    %49 = arith.mulf %40, %3 : vector<128x32xf32>
    %50 = arith.addf %48, %49 : vector<128x32xf32>
    %c0_17 = arith.constant 0 : index
    %c0_18 = arith.constant 0 : index
    %51 = vector.load %arg9[%c0_17, %c0_18] : memref<128x32xf32, #tpu.memory_space<vmem>>, vector<128x32xf32>
    tpu.vector_store %arg9[%c0_17, %c0_18], %50 {strides = array<i32>} : memref<128x32xf32, #tpu.memory_space<vmem>>, vector<128x32xf32>,
    %c1_i32 = arith.constant 1 : i32
    %52 = arith.cmpi eq, %arg1, %c1_i32 : i32
    %53 = arith.extui %52 : i1 to i32
    %c0_i32_19 = arith.constant 0 : i32
    %54 = arith.cmpi ne, %53, %c0_i32_19 : i32
    scf.if %54 {
      %c0_20 = arith.constant 0 : index
      %c0_21 = arith.constant 0 : index
      %55 = vector.load %arg8[%c0_20, %c0_21] : memref<128x32xf32, #tpu.memory_space<vmem>>, vector<128x32xf32>
      tpu.vector_store %arg8[%c0_20, %c0_21], %50 {strides = array<i32>} : memref<128x32xf32, #tpu.memory_space<vmem>>, vector<128x32xf32>,
    } else {
    }
    return
  }
  func.func @transform_0(%arg0: i32, %arg1: i32) -> (i32, i32, i32) {
    %c0_i32 = arith.constant 0 : i32
    %c0_i32_0 = arith.constant 0 : i32
    return %arg1, %arg0, %c0_i32 : i32, i32, i32
  }
  func.func @transform_1(%arg0: i32, %arg1: i32) -> (i32, i32) {
    %c0_i32 = arith.constant 0 : i32
    %c0_i32_0 = arith.constant 0 : i32
    return %arg0, %c0_i32 : i32, i32
  }
  func.func @transform_2(%arg0: i32, %arg1: i32) -> (i32, i32, i32) {
    %c0_i32 = arith.constant 0 : i32
    %c0_i32_0 = arith.constant 0 : i32
    %c0_i32_1 = arith.constant 0 : i32
    %c0_i32_2 = arith.constant 0 : i32
    return %c0_i32, %c0_i32_0, %c0_i32_1 : i32, i32, i32
  }
  func.func @transform_3(%arg0: i32, %arg1: i32) -> (i32, i32, i32) {
    %c0_i32 = arith.constant 0 : i32
    %c0_i32_0 = arith.constant 0 : i32
    %c0_i32_1 = arith.constant 0 : i32
    %c0_i32_2 = arith.constant 0 : i32
    return %c0_i32, %c0_i32_0, %c0_i32_1 : i32, i32, i32
  }
  func.func @transform_4(%arg0: i32, %arg1: i32) -> (i32, i32, i32) {
    %c0_i32 = arith.constant 0 : i32
    %c0_i32_0 = arith.constant 0 : i32
    %c0_i32_1 = arith.constant 0 : i32
    %c0_i32_2 = arith.constant 0 : i32
    return %c0_i32, %c0_i32_0, %c0_i32_1 : i32, i32, i32
  }
  func.func @transform_5(%arg0: i32, %arg1: i32) -> (i32, i32, i32) {
    %c0_i32 = arith.constant 0 : i32
    %c0_i32_0 = arith.constant 0 : i32
    %c0_i32_1 = arith.constant 0 : i32
    %c0_i32_2 = arith.constant 0 : i32
    return %c0_i32, %c0_i32_0, %c0_i32_1 : i32, i32, i32
  }
  func.func @transform_6(%arg0: i32, %arg1: i32) -> (i32, i32) {
    %c0_i32 = arith.constant 0 : i32
    %c0_i32_0 = arith.constant 0 : i32
    return %arg0, %c0_i32 : i32, i32
  }
}

</mosaic_0001>

<bundles_post_ra>
// kernel: tpu_custom_call.1
= control target key start
LH: loop header
LB: loop body
LE: loop exit
PB: predicated region body
PF: predicated region fallthrough
CT: control target
= control target key end

     0   :  { %s1737_s21 = smov 0   ;;  %s1739_s22 = smov 0   ;;  %s2347_s0 = inlined_call_operand.vmem [shape: bf16[2,128,64], index: 0, kind: input, shape index: {}]   ;;  %s2348_s1 = inlined_call_operand.vmem [shape: f32[128,32], index: 1, kind: input, shape index: {}, may-alias: {1,6}]   ;;  %s2349_s2 = inlined_call_operand.vmem [shape: bf16[2,64,96], index: 2, kind: input, shape index: {}]   ;;  %s2350_s3 = inlined_call_operand.vmem [shape: f32[2,1,96], index: 3, kind: input, shape index: {}]   ;;  %s2351_s4 = inlined_call_operand.vmem [shape: bf16[2,32,96], index: 4, kind: input, shape index: {}]   ;;  %s2352_s5 = inlined_call_operand.vmem [shape: f32[2,1,96], index: 5, kind: input, shape index: {}]   ;;  %s2353_s6 = inlined_call_operand.vmem [shape: f32[128,32], index: 6, kind: output, shape index: {}, may-alias: {1,6}]  }
   0x1   :  { %s1741_s23 = smov 0  }
   0x2 LB: > { %s25_s24 = sadd.s32 1, %s1693_s22  ;;  %p1408_p0 = scmp.ge.s32.totalorder %s1697_s23, 1  ;;  %s1697_s23 = sphi %s1741_s23, %s16_s23   ;;  %s1693_s22 = sphi %s1739_s22, %s2355_s22   ;;  %s1689_s21 = sphi %s1737_s21, %s2354_s21  }
   0x3   : > { %p26_p1 = scmp.ge.s32.totalorder %s25_s24, 2  ;;  %p242_p2 = scmp.lt.s32.totalorder %s1697_s23, 3 }
   0x5   : > { %s2357_s24 = smov (%p26_p1, %s25_s24), 0  ;;  %p243_p3 = pnand %p1408_p0, %p242_p2 }
   0x6   : > { %p282_p4 = scmp.lt.s32.totalorder (!%p243_p3), %s1689_s21, 1  ;;  %p1411_p5 = scmp.ne.s32.totalorder (!%p243_p3), %s1689_s21, 0 }
   0x7   : > { %246 = sbr.rel (%p243_p3) target bundleno = 770 (0x302), region = 44 }
   0xe   : > { %s283_s25 = scalar_select %p282_p4, %s1689_s21, 1 }
   0xf   : > { %307 = sbr.rel (%p1411_p5) target bundleno = 24 (0x18), region = 48  ;;  %v308_v0 = vld [vmem:[%s2348_s1] sm:$0xff] (!%p1411_p5)  ;;  %vm324_vm0 = vcmask (!%p1411_p5), 261120   ;;  %v309_v1 = vld [vmem:[%s2348_s1 + $0x8] sm:$0xff] (!%p1411_p5)  ;;  %v310_v2 = vld [vmem:[%s2348_s1 + $0x10] sm:$0xff] (!%p1411_p5) }
  0x10   : > { %s1469_s26 = sshll.u32 %s283_s25, 6  ;;  %325 = vst.msk [vmem:[#allocation2] sm:$0xff] (!%p1411_p5), %vm324_vm0, %v308_v0  ;;  %326 = vst.msk [vmem:[#allocation2 + $0x8] sm:$0xff] (!%p1411_p5), %vm324_vm0, %v309_v1  ;;  %v311_v3 = vld [vmem:[%s2348_s1 + $0x18] sm:$0xff] (!%p1411_p5)  ;;  %v312_v4 = vld [vmem:[%s2348_s1 + $0x20] sm:$0xff] (!%p1411_p5) }
  0x11   : > { %s1762_s29 = scalar_lea.vmem %s2347_s0, %s1469_s26  ;;  %327 = vst.msk [vmem:[#allocation2 + $0x10] sm:$0xff] (!%p1411_p5), %vm324_vm0, %v310_v2  ;;  %v313_v5 = vld [vmem:[%s2348_s1 + $0x28] sm:$0xff] (!%p1411_p5)  ;;  %328 = vst.msk [vmem:[#allocation2 + $0x18] sm:$0xff] (!%p1411_p5), %vm324_vm0, %v311_v3  ;;  %v314_v6 = vld [vmem:[%s2348_s1 + $0x30] sm:$0xff] (!%p1411_p5) }
  0x12   : > { %329 = vst.msk [vmem:[#allocation2 + $0x20] sm:$0xff] (!%p1411_p5), %vm324_vm0, %v312_v4  ;;  %330 = vst.msk [vmem:[#allocation2 + $0x28] sm:$0xff] (!%p1411_p5), %vm324_vm0, %v313_v5  ;;  %v315_v7 = vld [vmem:[%s2348_s1 + $0x38] sm:$0xff] (!%p1411_p5)  ;;  %v316_v8 = vld [vmem:[%s2348_s1 + $0x40] sm:$0xff] (!%p1411_p5) }
  0x13   : > { %331 = vst.msk [vmem:[#allocation2 + $0x30] sm:$0xff] (!%p1411_p5), %vm324_vm0, %v314_v6  ;;  %332 = vst.msk [vmem:[#allocation2 + $0x38] sm:$0xff] (!%p1411_p5), %vm324_vm0, %v315_v7  ;;  %v317_v9 = vld [vmem:[%s2348_s1 + $0x48] sm:$0xff] (!%p1411_p5)  ;;  %v318_v10 = vld [vmem:[%s2348_s1 + $0x50] sm:$0xff] (!%p1411_p5) }
  0x14   : > { %333 = vst.msk [vmem:[#allocation2 + $0x40] sm:$0xff] (!%p1411_p5), %vm324_vm0, %v316_v8  ;;  %v319_v11 = vld [vmem:[%s2348_s1 + $0x58] sm:$0xff] (!%p1411_p5)  ;;  %334 = vst.msk [vmem:[#allocation2 + $0x48] sm:$0xff] (!%p1411_p5), %vm324_vm0, %v317_v9  ;;  %v320_v12 = vld [vmem:[%s2348_s1 + $0x60] sm:$0xff] (!%p1411_p5) }
  0x15   : > { %335 = vst.msk [vmem:[#allocation2 + $0x50] sm:$0xff] (!%p1411_p5), %vm324_vm0, %v318_v10  ;;  %336 = vst.msk [vmem:[#allocation2 + $0x58] sm:$0xff] (!%p1411_p5), %vm324_vm0, %v319_v11  ;;  %v321_v13 = vld [vmem:[%s2348_s1 + $0x68] sm:$0xff] (!%p1411_p5)  ;;  %v322_v14 = vld [vmem:[%s2348_s1 + $0x70] sm:$0xff] (!%p1411_p5) }
  0x16   : > { %337 = vst.msk [vmem:[#allocation2 + $0x60] sm:$0xff] %vm324_vm0, %v320_v12  ;;  %338 = vst.msk [vmem:[#allocation2 + $0x68] sm:$0xff] %vm324_vm0, %v321_v13  ;;  %v323_v15 = vld [vmem:[%s2348_s1 + $0x78] sm:$0xff] }
  0x17   : > { %339 = vst.msk [vmem:[#allocation2 + $0x70] sm:$0xff] %vm324_vm0, %v322_v14  ;;  %340 = vst.msk [vmem:[#allocation2 + $0x78] sm:$0xff] %vm324_vm0, %v323_v15 }
  0x18 PF: > { %s1470_s19 = sshll.u32 %s1689_s21, 5  ;;  %s1471_s20 = sshll.u32 %s1689_s21, 4  ;;  %vm613_vm1 = vcmask 261120   ;;  %v1571_v26 = vld [vmem:[%s1762_s29] sm:$0xff]   ;;  %vm465_vm2 = vcmask 523264   ;;  %v1572_v36 = vld [vmem:[%s1762_s29 + $0x8] sm:$0xff]  }
  0x19   : > { %v1831_v16 = vld [vmem:[#allocation2] sm:$0xff]  ;;  %v1833_v17 = vld [vmem:[#allocation2 + $0x8] sm:$0xff]  ;;  %s359_s27 = scalar_lea.vmem %s2349_s2, %s1470_s19  ;;  %s372_s7 = scalar_lea.vmem %s2351_s4, %s1471_s20  ;;  %1502 = vmatprep.mubr.msk.bf16.mxu0 %vm465_vm2, %v1571_v26  ;;  %v1573_v38 = vld [vmem:[%s1762_s29 + $0x10] sm:$0xff]  }
  0x1a   : > { %v587_v18 = vpack.c.bf16 %v1833_v17, %v1831_v16  ;;  %v1565_v19 = vld [vmem:[%s359_s27] sm:$0xff]   ;;  %v1567_v21 = vld [vmem:[%s359_s27 + $0x8] sm:$0xff]   ;;  %v1844_v22 = vld [vmem:[#allocation2 + $0x10] sm:$0xff]  ;;  %s377_s10 = scalar_lea.vmem %s2352_s5, %s1689_s21  ;;  %s1699_s11 = smov 64  }
  0x1b   : > { %v1566_v20 = vld [vmem:[%s372_s7] sm:$0xff]   ;;  %1494 = vmatprep.subr.bf16.mxu0 %v1565_v19  ;;  %v1846_v23 = vld [vmem:[#allocation2 + $0x18] sm:$0xff]  ;;  %v1568_v24 = vld [vmem:[%s372_s7 + $0x8] sm:$0xff]   ;;  %s368_s13 = scalar_lea.vmem %s2350_s3, %s1689_s21  ;;  %s1700_s14 = smov 32  }
  0x1c   : > { %1522 = vmatprep.mubr.msk.bf16.mxu1 %vm613_vm1, %v587_v18  ;;  %1518 = vmatprep.subr.bf16.mxu1 %v1566_v20  ;;  %v1569_v25 = vld [vmem:[%s359_s27 + $0x10] sm:$0xff]   ;;  %v1849_v27 = vld [vmem:[#allocation2 + $0x20] sm:$0xff]  ;;  %v1851_v28 = vld [vmem:[#allocation2 + $0x28] sm:$0xff]  ;;  %v588_v29 = vpack.c.bf16 %v1846_v23, %v1844_v22  ;;  %s1701_s15 = smov 96   ;;  %p1464_p6 = scmp.ne.s32.totalorder %s1689_s21, 1 }
  0x1d   : > { %1495 = vmatpush3.bf16.msra.mxu0 %v1565_v19  ;;  %1519 = vmatpush3.bf16.msra.mxu1 %v1566_v20  ;;  %v1570_v30 = vld [vmem:[%s359_s27 + $0x18] sm:$0xff]   ;;  %v589_v31 = vpack.c.bf16 %v1851_v28, %v1849_v27  ;;  %v1859_v32 = vld [vmem:[#allocation2 + $0x30] sm:$0xff]  ;;  %v1864_v34 = vld [vmem:[#allocation2 + $0x40] sm:$0xff] }
  0x1e   : > { %1496 = vmatprep.subr.bf16.mxu0 %v1567_v21  ;;  %1520 = vmatprep.subr.bf16.mxu1 %v1568_v24  ;;  %v1862_v33 = vld [vmem:[#allocation2 + $0x38] sm:$0xff]  ;;  %v1866_v35 = vld [vmem:[#allocation2 + $0x48] sm:$0xff]  ;;  %v1878_v40 = vld [vmem:[#allocation2 + $0x50] sm:$0xff] }
  0x1f   : > { %v590_v37 = vpack.c.bf16 %v1862_v33, %v1859_v32  ;;  %v591_v39 = vpack.c.bf16 %v1866_v35, %v1864_v34  ;;  %v1880_v41 = vld [vmem:[#allocation2 + $0x58] sm:$0xff]  ;;  %v1882_v42 = vld [vmem:[#allocation2 + $0x60] sm:$0xff]  ;;  %v1884_v43 = vld [vmem:[#allocation2 + $0x68] sm:$0xff] }
  0x20   : > { %v1574_v44 = vld [vmem:[%s1762_s29 + $0x18] sm:$0xff]   ;;  %v592_v45 = vpack.c.bf16 %v1880_v41, %v1878_v40  ;;  %v1575_v46 = vld [vmem:[%s1762_s29 + $0x20] sm:$0xff]   ;;  %v593_v47 = vpack.c.bf16 %v1884_v43, %v1882_v42  ;;  %v1896_v48 = vld [vmem:[#allocation2 + $0x70] sm:$0xff] }
  0x21   : > { %1497 = vmatpush3.bf16.msra.mxu0 %v1567_v21  ;;  %1521 = vmatpush3.bf16.msra.mxu1 %v1568_v24  ;;  %v1898_v49 = vld [vmem:[#allocation2 + $0x78] sm:$0xff]  ;;  %v1576_v50 = vld [vmem:[%s1762_s29 + $0x28] sm:$0xff]   ;;  %v1577_v52 = vld [vmem:[%s1762_s29 + $0x30] sm:$0xff]  }
  0x22   : > { %1498 = vmatprep.subr.bf16.mxu0 %v1569_v25  ;;  %v594_v51 = vpack.c.bf16 %v1898_v49, %v1896_v48  ;;  %v1578_v53 = vld [vmem:[%s1762_s29 + $0x38] sm:$0xff]   ;;  %v1437_v54 = vld [vmem:[%s377_s10] ss:$0 sm:$0xff] }
  0x24   : > { %1523 = vmatmul.mubr.msk.bf16.vlgmr.msra.gmra.mrb[0].mxu1 %vm613_vm1, %v588_v29 }
  0x25   : > { %1499 = vmatpush3.bf16.msra.mxu0 %v1569_v25  ;;  %1526 = vmatprep.mubr.msk.bf16.mxu1 %vm613_vm1, %v589_v31 }
  0x26   : > { %1500 = vmatprep.subr.bf16.mxu0 %v1570_v30 }
  0x29   : > { %1501 = vmatpush3.bf16.msra.mxu0 %v1570_v30 }
  0x2c   : > { %1503 = vmatmul.mubr.msk.bf16.vlgmr.msra.gmra.mrb[0].mxu0 %vm465_vm2, %v1572_v36  ;;  %1527 = vmatmul.mubr.msk.bf16.gmra.mrb[4].mxu1 %vm613_vm1, %v590_v37 }
  0x2d   : > { %1506 = vmatprep.mubr.msk.bf16.mxu0 %vm465_vm2, %v1573_v38  ;;  %1530 = vmatprep.mubr.msk.bf16.mxu1 %vm613_vm1, %v591_v39 }
  0x34   : > { %1507 = vmatmul.mubr.msk.bf16.gmra.mrb[4].mxu0 %vm465_vm2, %v1574_v44  ;;  %1531 = vmatmul.mubr.msk.bf16.gmra.mrb[8].mxu1 %vm613_vm1, %v592_v45 }
  0x35   : > { %1510 = vmatprep.mubr.msk.bf16.mxu0 %vm465_vm2, %v1575_v46  ;;  %1534 = vmatprep.mubr.msk.bf16.mxu1 %vm613_vm1, %v593_v47 }
  0x3c   : > { %1511 = vmatmul.mubr.msk.bf16.gmra.mrb[8].mxu0 %vm465_vm2, %v1576_v50  ;;  %1535 = vmatmul.mubr.msk.bf16.gmra.mrb[12].mxu1 %vm613_vm1, %v594_v51 }
  0x3d   : > { %1514 = vmatprep.mubr.msk.bf16.mxu0 %vm465_vm2, %v1577_v52 }
  0x44   : > { %1515 = vmatmul.mubr.msk.bf16.gmra.mrb[12].mxu0 %vm465_vm2, %v1578_v53 }
  0xf7   : > { %v1524_v55 = vpop.f32.mrb[0].mxu1 }
  0xf8   : > { %v1913_v56 = vadd.f32 %v1524_v55, %v1437_v54  ;;  %v672_v57 = vpop.f32.mrb[1].mxu1 }
  0xf9   : > { %v1915_v58 = vadd.f32 %v1437_v54, %v672_v57  ;;  %v1525_v59 = vpop.f32.mrb[2].mxu1  ;;  %v1985_v57 = vld [vmem:[%s368_s13] ss:$0 sm:$0xff] }
  0xfa   : > { %867 = vrot.lane.b32.xlu1 %v1913_v56, %s1699_s11  ;;  %v675_v60 = vpop.f32.mrb[3].mxu1  ;;  %v1921_v61 = vadd.f32 %v1525_v59, %v1437_v54 }
  0xfb   : > { %863 = vrot.lane.b32.xlu0 %v1915_v58, %s1699_s11  ;;  %v1923_v62 = vadd.f32 %v1437_v54, %v675_v60 }
  0xfe   : > { %869 = vrot.lane.b32.xlu1 %v1921_v61, %s1699_s11 }
  0xff   : > { %v1504_v63 = vpop.f32.mrb[0].mxu0  ;;  %v1528_v0 = vpop.f32.mrb[4].mxu1  ;;  %865 = vrot.lane.b32.xlu0 %v1923_v62, %s1699_s11 }
 0x100   : > { %v524_v1 = vpop.f32.mrb[1].mxu0  ;;  %v1929_v2 = vadd.f32 %v1528_v0, %v1437_v54  ;;  %v688_v3 = vpop.f32.mrb[5].mxu1  ;;  %v1988_v59 = vadd.f32 %v1504_v63, %v1985_v57 }
 0x101   : > { %v1505_v4 = vpop.f32.mrb[2].mxu0  ;;  %v1529_v5 = vpop.f32.mrb[6].mxu1  ;;  %v1937_v9 = vadd.f32 %v1437_v54, %v688_v3  ;;  %v1991_v60 = vadd.f32 %v1985_v57, %v524_v1 }
 0x102   : > { %v527_v6 = vpop.f32.mrb[3].mxu0  ;;  %v1931_v7 = vadd.f32 %v1529_v5, %v1437_v54  ;;  %v691_v8 = vpop.f32.mrb[7].mxu1  ;;  %v737_v0 = vadd.f32 %v1913_v56, %v1988_v59 }
 0x103   : > { %875 = vrot.lane.b32.xlu0 %v1929_v2, %s1699_s11  ;;  %v1939_v10 = vadd.f32 %v1437_v54, %v691_v8  ;;  %v735_v3 = vadd.f32 %v1915_v58, %v1991_v60  ;;  %v2003_v8 = vadd.f32 %v1985_v57, %v527_v6 }
 0x104   : > { %877 = vrot.lane.b32.xlu1 %v1931_v7, %s1699_s11  ;;  %v1450_v63 = vmul.f32 -1.442695, %v737_v0 }
 0x106   : > { %1579 = vpow2.f32 %v1450_v63 }
 0x107   : > { %v1508_v11 = vpop.f32.mrb[4].mxu0  ;;  %v1532_v12 = vpop.f32.mrb[8].mxu1  ;;  %871 = vrot.lane.b32.xlu0 %v1937_v9, %s1699_s11 }
 0x108   : > { %v540_v13 = vpop.f32.mrb[5].mxu0  ;;  %v1943_v14 = vadd.f32 %v1532_v12, %v1437_v54  ;;  %v704_v15 = vpop.f32.mrb[9].mxu1  ;;  %873 = vrot.lane.b32.xlu1 %v1939_v10, %s1699_s11  ;;  %v1448_v12 = vmul.f32 -1.442695, %v735_v3  ;;  %v2006_v1 = vadd.f32 %v1508_v11, %v1985_v57 }
 0x109   : > { %v1509_v18 = vpop.f32.mrb[6].mxu0  ;;  %v1533_v19 = vpop.f32.mrb[10].mxu1  ;;  %v1953_v25 = vadd.f32 %v1437_v54, %v704_v15 }
 0x10a   : > { %v543_v20 = vpop.f32.mrb[7].mxu0  ;;  %v1947_v21 = vadd.f32 %v1533_v19, %v1437_v54  ;;  %v707_v24 = vpop.f32.mrb[11].mxu1  ;;  %v2011_v56 = vadd.f32 %v1509_v18, %v1985_v57  ;;  %1581 = vpow2.f32 %v1448_v12  ;;  %v741_v58 = vadd.f32 %v1929_v2, %v2006_v1 }
 0x10b   : > { %883 = vrot.lane.b32.xlu0 %v1943_v14, %s1699_s11  ;;  %v1955_v26 = vadd.f32 %v1437_v54, %v707_v24  ;;  %v2021_v19 = vadd.f32 %v1985_v57, %v543_v20 }
 0x10c   : > { %885 = vrot.lane.b32.xlu1 %v1947_v21, %s1699_s11  ;;  %v742_v11 = vadd.f32 %v1931_v7, %v2011_v56 }
 0x10e   : > { %v1455_v2 = vmul.f32 -1.442695, %v742_v11 }
 0x10f   : > { %v1512_v29 = vpop.f32.mrb[8].mxu0  ;;  %v1536_v30 = vpop.f32.mrb[12].mxu1  ;;  %879 = vrot.lane.b32.xlu0 %v1953_v25, %s1699_s11 }
 0x110   : > { %v556_v31 = vpop.f32.mrb[9].mxu0  ;;  %v720_v36 = vpop.f32.mrb[13].mxu1  ;;  %881 = vrot.lane.b32.xlu1 %v1955_v26, %s1699_s11  ;;  %v1967_v47 = vadd.f32 %v1536_v30, %v1437_v54  ;;  %v2026_v24 = vadd.f32 %v1512_v29, %v1985_v57 }
 0x111   : > { %v1513_v37 = vpop.f32.mrb[10].mxu0  ;;  %v1961_v38 = vadd.f32 %v1437_v54, %v720_v36  ;;  %v1537_v39 = vpop.f32.mrb[14].mxu1 }
 0x112   : > { %v559_v44 = vpop.f32.mrb[11].mxu0  ;;  %v723_v45 = vpop.f32.mrb[15].mxu1  ;;  %v1975_v52 = vadd.f32 %v1537_v39, %v1437_v54  ;;  %v2031_v30 = vadd.f32 %v1513_v37, %v1985_v57  ;;  %v745_v20 = vadd.f32 %v1943_v14, %v2026_v24  ;;  %v2036_v39 = vadd.f32 %v1985_v57, %v556_v31 }
 0x113   : > { %887 = vrot.lane.b32.xlu0 %v1961_v38, %s1699_s11  ;;  %v1965_v46 = vadd.f32 %v1437_v54, %v723_v45  ;;  %v1994_v54 = vadd.f32 %v1505_v4, %v1985_v57  ;;  %v736_v4 = vadd.f32 %v1923_v62, %v2003_v8  ;;  %v1454_v62 = vmul.f32 -1.442695, %v741_v58  ;;  %v1580_v36 = vpop.eup %1579 }
 0x114   : > { %v801_v0 = vadd.f32 1.0, %v1580_v36  ;;  %v2041_v37 = vadd.f32 %v1985_v57, %v559_v44  ;;  %v1458_v3 = vmul.f32 -1.442695, %v745_v20 }
 0x115   : > { %889 = vrot.lane.b32.xlu1 %v1965_v46, %s1699_s11  ;;  %v738_v5 = vadd.f32 %v1921_v61, %v1994_v54  ;;  %v2016_v61 = vadd.f32 %v1985_v57, %v540_v13  ;;  %v1449_v6 = vmul.f32 -1.442695, %v736_v4  ;;  %v740_v13 = vadd.f32 %v1939_v10, %v2021_v19 }
 0x116   : > { %v746_v10 = vadd.f32 %v1947_v21, %v2031_v30  ;;  %v744_v21 = vadd.f32 %v1955_v26, %v2041_v37 }
 0x117   : > { %v1971_v50 = vpop.f32.mrb[12].mxu0  ;;  %891 = vrot.lane.b32.xlu0 %v1967_v47, %s1699_s11  ;;  %v1451_v15 = vmul.f32 -1.442695, %v738_v5  ;;  %v739_v18 = vadd.f32 %v1937_v9, %v2016_v61  ;;  %v1582_v9 = vpop.eup %1581  ;;  %v1453_v29 = vmul.f32 -1.442695, %v740_v13  ;;  %v743_v5 = vadd.f32 %v1953_v25, %v2036_v39 }
 0x118   : > { %v572_v51 = vpop.f32.mrb[13].mxu0  ;;  %v799_v31 = vadd.f32 1.0, %v1582_v9  ;;  %v2055_v25 = vadd.f32 %v1971_v50, %v1985_v57 }
 0x119   : > { %v1977_v53 = vpop.f32.mrb[14].mxu0  ;;  %893 = vrot.lane.b32.xlu1 %v1975_v52, %s1699_s11  ;;  %1583 = vpow2.f32 %v1451_v15  ;;  %v1452_v7 = vmul.f32 -1.442695, %v739_v18  ;;  %v2046_v14 = vadd.f32 %v1985_v57, %v572_v51  ;;  %v1459_v15 = vmul.f32 -1.442695, %v746_v10 }
 0x11a   : > { %v575_v55 = vpop.f32.mrb[15].mxu0  ;;  %1585 = vpow2.f32 %v1449_v6  ;;  %v1456_v4 = vmul.f32 -1.442695, %v743_v5  ;;  %v2061_v26 = vadd.f32 %v1977_v53, %v1985_v57  ;;  %v749_v50 = vadd.f32 %v1967_v47, %v2055_v25 }
 0x11b   : > { %1587 = vpow2.f32 %v1454_v62  ;;  %v2051_v44 = vadd.f32 %v1985_v57, %v575_v55  ;;  %v747_v51 = vadd.f32 %v1961_v38, %v2046_v14  ;;  %v1457_v62 = vmul.f32 -1.442695, %v744_v21 }
 0x11c   : > { %1589 = vpow2.f32 %v1455_v2  ;;  %v750_v36 = vadd.f32 %v1975_v52, %v2061_v26  ;;  %v1462_v53 = vmul.f32 -1.442695, %v749_v50 }
 0x11d   : > { %1591 = vpow2.f32 %v1452_v7  ;;  %v748_v55 = vadd.f32 %v1965_v46, %v2051_v44  ;;  %v1460_v18 = vmul.f32 -1.442695, %v747_v51 }
 0x11e   : > { %1593 = vpow2.f32 %v1453_v29 }
 0x11f   : > { %1595 = vrcp.f32 %v801_v0  ;;  %v1461_v7 = vmul.f32 -1.442695, %v748_v55 }
 0x120   : > { %1597 = vpow2.f32 %v1458_v3 }
 0x121   : > { %1599 = vrcp.f32 %v799_v31 }
 0x123   : > { %v1584_v45 = vpop.eup %1583 }
 0x124   : > { %v802_v63 = vadd.f32 1.0, %v1584_v45  ;;  %v1586_v12 = vpop.eup %1585  ;;  %v1463_v45 = vmul.f32 -1.442695, %v750_v36 }
 0x125   : > { %v1588_v58 = vpop.eup %1587  ;;  %v800_v6 = vadd.f32 1.0, %v1586_v12 }
 0x126   : > { %1601 = vrcp.f32 %v802_v63  ;;  %v1590_v11 = vpop.eup %1589  ;;  %v805_v38 = vadd.f32 1.0, %v1588_v58 }
 0x127   : > { %1603 = vpow2.f32 %v1459_v15  ;;  %v1592_v2 = vpop.eup %1591  ;;  %v806_v13 = vadd.f32 1.0, %v1590_v11 }
 0x128   : > { %1605 = vpow2.f32 %v1456_v4  ;;  %v1594_v20 = vpop.eup %1593  ;;  %v803_v46 = vadd.f32 1.0, %v1592_v2 }
 0x129   : > { %1607 = vrcp.f32 %v800_v6  ;;  %v2069_v57 = vpop.eup %1595  ;;  %v804_v52 = vadd.f32 1.0, %v1594_v20 }
 0x12a   : > { %1609 = vpow2.f32 %v1457_v62  ;;  %v1598_v9 = vpop.eup %1597 }
 0x12b   : > { %1611 = vpow2.f32 %v1460_v18  ;;  %v2071_v29 = vpop.eup %1599  ;;  %v809_v31 = vadd.f32 1.0, %v1598_v9 }
 0x12c   : > { %1613 = vrcp.f32 %v805_v38 }
 0x12d   : > { %1615 = vrcp.f32 %v806_v13 }
 0x12e   : > { %1617 = vpow2.f32 %v1461_v7 }
 0x12f   : > { %1619 = vpow2.f32 %v1462_v53 }
 0x130   : > { %v2074_v3 = vpop.eup %1601  ;;  %1621 = vrcp.f32 %v803_v46 }
 0x131   : > { %v1604_v5 = vpop.eup %1603  ;;  %1623 = vpow2.f32 %v1463_v45 }
 0x132   : > { %v1606_v63 = vpop.eup %1605  ;;  %1625 = vrcp.f32 %v804_v52  ;;  %v810_v58 = vadd.f32 1.0, %v1604_v5 }
 0x133   : > { %v2079_v51 = vpop.eup %1607  ;;  %1627 = vrcp.f32 %v809_v31  ;;  %v807_v11 = vadd.f32 1.0, %v1606_v63 }
 0x134   : > { %v1610_v6 = vpop.eup %1609  ;;  %1629 = vrcp.f32 %v810_v58 }
 0x135   : > { %v1612_v62 = vpop.eup %1611  ;;  %v808_v2 = vadd.f32 1.0, %v1610_v6  ;;  %1631 = vrcp.f32 %v807_v11 }
 0x136   : > { %v2083_v55 = vpop.eup %1613  ;;  %v811_v20 = vadd.f32 1.0, %v1612_v62 }
 0x137   : > { %v2086_v38 = vpop.eup %1615  ;;  %1633 = vrcp.f32 %v808_v2 }
 0x138   : > { %v1618_v7 = vpop.eup %1617  ;;  %1635 = vrcp.f32 %v811_v20 }
 0x139   : > { %v1620_v53 = vpop.eup %1619  ;;  %v812_v45 = vadd.f32 1.0, %v1618_v7 }
 0x13a   : > { %v2091_v46 = vpop.eup %1621  ;;  %v813_v5 = vadd.f32 1.0, %v1620_v53 }
 0x13b   : > { %v1624_v52 = vpop.eup %1623  ;;  %1637 = vrcp.f32 %v812_v45 }
 0x13c   : > { %v2096_v31 = vpop.eup %1625  ;;  %1639 = vrcp.f32 %v813_v5 }
 0x13d   : > { %v2099_v63 = vpop.eup %1627 }
 0x13e   : > { %v2104_v6 = vpop.eup %1629 }
 0x13f   : > { %v2107_v11 = vpop.eup %1631 }
 0x16c   : > { %v868_v47 = vpop.permute.xlu1 %867 }
 0x16d   : > { %v913_v0 = vmul.f32 %v2069_v57, %v868_v47  ;;  %v864_v10 = vpop.permute.xlu0 %863 }
 0x16e   : > { %v911_v15 = vmul.f32 %v2071_v29, %v864_v10 }
 0x16f   : > { %947 = vrot.lane.b32.xlu0 %v913_v0, %s1699_s11 }
 0x170   : > { %v870_v12 = vpop.permute.xlu1 %869 }
 0x171   : > { %v914_v21 = vmul.f32 %v2074_v3, %v870_v12  ;;  %v866_v4 = vpop.permute.xlu0 %865 }
 0x172   : > { %v912_v50 = vmul.f32 %v2079_v51, %v866_v4 }
 0x173   : > { %949 = vrot.lane.b32.xlu1 %v914_v21, %s1699_s11  ;;  %943 = vrot.lane.b32.xlu0 %v911_v15, %s1699_s11  ;;  %v814_v21 = vadd.f32 1.0, %v1624_v52 }
 0x175   : > { %v876_v18 = vpop.permute.xlu0 %875  ;;  %1641 = vrcp.f32 %v814_v21 }
 0x176   : > { %v917_v13 = vmul.f32 %v2083_v55, %v876_v18  ;;  %v878_v36 = vpop.permute.xlu1 %877 }
 0x177   : > { %945 = vrot.lane.b32.xlu1 %v912_v50, %s1699_s11  ;;  %v918_v9 = vmul.f32 %v2086_v38, %v878_v36 }
 0x178   : > { %955 = vrot.lane.b32.xlu0 %v917_v13, %s1699_s11  ;;  %v2112_v13 = vpop.eup %1633 }
 0x179   : > { %v872_v47 = vpop.permute.xlu0 %871  ;;  %v2115_v36 = vpop.eup %1635 }
 0x17a   : > { %v915_v0 = vmul.f32 %v2091_v46, %v872_v47  ;;  %v874_v10 = vpop.permute.xlu1 %873 }
 0x17b   : > { %957 = vrot.lane.b32.xlu1 %v918_v9, %s1699_s11  ;;  %v916_v12 = vmul.f32 %v2096_v31, %v874_v10  ;;  %v2120_v9 = vpop.eup %1637 }
 0x17c   : > { %951 = vrot.lane.b32.xlu0 %v915_v0, %s1699_s11  ;;  %v2123_v45 = vpop.eup %1639 }
 0x17d   : > { %v884_v15 = vpop.permute.xlu0 %883 }
 0x17e   : > { %v921_v4 = vmul.f32 %v2099_v63, %v884_v15  ;;  %v886_v58 = vpop.permute.xlu1 %885 }
 0x17f   : > { %953 = vrot.lane.b32.xlu1 %v916_v12, %s1699_s11  ;;  %v922_v62 = vmul.f32 %v2104_v6, %v886_v58  ;;  %v2128_v5 = vpop.eup %1641 }
 0x180   : > { %963 = vrot.lane.b32.xlu0 %v921_v4, %s1699_s11 }
 0x181   : > { %v880_v50 = vpop.permute.xlu0 %879 }
 0x182   : > { %v919_v18 = vmul.f32 %v2107_v11, %v880_v50  ;;  %v882_v2 = vpop.permute.xlu1 %881 }
 0x183   : > { %965 = vrot.lane.b32.xlu1 %v922_v62, %s1699_s11  ;;  %v920_v7 = vmul.f32 %v2112_v13, %v882_v2 }
 0x184   : > { %959 = vrot.lane.b32.xlu0 %v919_v18, %s1699_s11 }
 0x185   : > { %v888_v20 = vpop.permute.xlu0 %887 }
 0x186   : > { %v923_v53 = vmul.f32 %v2115_v36, %v888_v20 }
 0x187   : > { %961 = vrot.lane.b32.xlu1 %v920_v7, %s1699_s11  ;;  %v890_v47 = vpop.permute.xlu1 %889 }
 0x188   : > { %967 = vrot.lane.b32.xlu0 %v923_v53, %s1699_s11  ;;  %v924_v0 = vmul.f32 %v2120_v9, %v890_v47 }
 0x189   : > { %v892_v10 = vpop.permute.xlu0 %891 }
 0x18a   : > { %v925_v52 = vmul.f32 %v2123_v45, %v892_v10 }
 0x18b   : > { %969 = vrot.lane.b32.xlu1 %v924_v0, %s1699_s11  ;;  %v894_v12 = vpop.permute.xlu1 %893 }
 0x18c   : > { %971 = vrot.lane.b32.xlu0 %v925_v52, %s1699_s11  ;;  %v926_v15 = vmul.f32 %v2128_v5, %v894_v12 }
 0x18f   : > { %973 = vrot.lane.b32.xlu1 %v926_v15, %s1699_s11 }
 0x190   : > { %1135 = vrot.lane.b32.xlu0 %v1831_v16, %s1700_s14 }
 0x193   : > { %1137 = vrot.lane.b32.xlu1 %v1833_v17, %s1700_s14 }
 0x194   : > { %1139 = vrot.lane.b32.xlu0 %v1844_v22, %s1700_s14 }
 0x197   : > { %1141 = vrot.lane.b32.xlu1 %v1846_v23, %s1700_s14 }
 0x198   : > { %1143 = vrot.lane.b32.xlu0 %v1849_v27, %s1700_s14 }
 0x19b   : > { %1145 = vrot.lane.b32.xlu1 %v1851_v28, %s1700_s14 }
 0x19c   : > { %1147 = vrot.lane.b32.xlu0 %v1859_v32, %s1700_s14 }
 0x19f   : > { %1149 = vrot.lane.b32.xlu1 %v1862_v33, %s1700_s14 }
 0x1a0   : > { %1151 = vrot.lane.b32.xlu0 %v1864_v34, %s1700_s14 }
 0x1a3   : > { %1153 = vrot.lane.b32.xlu1 %v1866_v35, %s1700_s14 }
 0x1a4   : > { %1155 = vrot.lane.b32.xlu0 %v1878_v40, %s1700_s14 }
 0x1a7   : > { %1157 = vrot.lane.b32.xlu1 %v1880_v41, %s1700_s14 }
 0x1a8   : > { %1159 = vrot.lane.b32.xlu0 %v1882_v42, %s1700_s14 }
 0x1ab   : > { %1161 = vrot.lane.b32.xlu1 %v1884_v43, %s1700_s14 }
 0x1e1   : > { %v948_v16 = vpop.permute.xlu0 %947 }
 0x1e2   : > { %v993_v17 = vadd.f32 %v948_v16, %v1988_v59 }
 0x1e4   : > { %1643 = vtanh.f32 %v993_v17 }
 0x1e5   : > { %v950_v22 = vpop.permute.xlu1 %949  ;;  %v944_v23 = vpop.permute.xlu0 %943 }
 0x1e6   : > { %v994_v27 = vadd.f32 %v950_v22, %v1994_v54  ;;  %v991_v28 = vadd.f32 %v944_v23, %v1991_v60 }
 0x1e8   : > { %1645 = vtanh.f32 %v994_v27 }
 0x1e9   : > { %1647 = vtanh.f32 %v991_v28  ;;  %v946_v32 = vpop.permute.xlu1 %945 }
 0x1ea   : > { %v992_v33 = vadd.f32 %v946_v32, %v2003_v8  ;;  %v956_v34 = vpop.permute.xlu0 %955 }
 0x1eb   : > { %v997_v35 = vadd.f32 %v956_v34, %v2006_v1 }
 0x1ec   : > { %1649 = vtanh.f32 %v992_v33 }
 0x1ed   : > { %1651 = vtanh.f32 %v997_v35  ;;  %v958_v40 = vpop.permute.xlu1 %957 }
 0x1ee   : > { %v1644_v41 = vpop.eup %1643  ;;  %v998_v42 = vadd.f32 %v958_v40, %v2011_v56  ;;  %v952_v43 = vpop.permute.xlu0 %951 }
 0x1ef   : > { %v995_v59 = vadd.f32 %v952_v43, %v2016_v61  ;;  %1059 = vrot.lane.b32.xlu0 %v1644_v41, %s1701_s15 }
 0x1f0   : > { %1653 = vtanh.f32 %v998_v42 }
 0x1f1   : > { %1655 = vtanh.f32 %v995_v59  ;;  %v954_v60 = vpop.permute.xlu1 %953 }
 0x1f2   : > { %v1646_v54 = vpop.eup %1645  ;;  %v996_v8 = vadd.f32 %v954_v60, %v2021_v19  ;;  %v964_v21 = vpop.permute.xlu0 %963 }
 0x1f3   : > { %v1648_v1 = vpop.eup %1647  ;;  %v1001_v4 = vadd.f32 %v964_v21, %v2026_v24  ;;  %1061 = vrot.lane.b32.xlu1 %v1646_v54, %s1701_s15 }
 0x1f4   : > { %1657 = vtanh.f32 %v996_v8  ;;  %1055 = vrot.lane.b32.xlu0 %v1648_v1, %s1701_s15  ;;  %v1026_v1 = vsub.f32 1.0, %v2074_v3 }
 0x1f5   : > { %1659 = vtanh.f32 %v1001_v4  ;;  %v966_v56 = vpop.permute.xlu1 %965 }
 0x1f6   : > { %v1650_v61 = vpop.eup %1649  ;;  %v1002_v58 = vadd.f32 %v966_v56, %v2031_v30  ;;  %v960_v62 = vpop.permute.xlu0 %959  ;;  %v1023_v56 = vsub.f32 1.0, %v2071_v29 }
 0x1f7   : > { %v1652_v50 = vpop.eup %1651  ;;  %v999_v18 = vadd.f32 %v960_v62, %v2036_v39  ;;  %1057 = vrot.lane.b32.xlu1 %v1650_v61, %s1701_s15 }
 0x1f8   : > { %1661 = vtanh.f32 %v1002_v58  ;;  %1067 = vrot.lane.b32.xlu0 %v1652_v50, %s1701_s15 }
 0x1f9   : > { %1663 = vtanh.f32 %v999_v18  ;;  %v962_v19 = vpop.permute.xlu1 %961 }
 0x1fa   : > { %v1654_v24 = vpop.eup %1653  ;;  %v1000_v2 = vadd.f32 %v962_v19, %v2041_v37  ;;  %v968_v7 = vpop.permute.xlu0 %967 }
 0x1fb   : > { %v1656_v20 = vpop.eup %1655  ;;  %1069 = vrot.lane.b32.xlu1 %v1654_v24, %s1701_s15  ;;  %v1003_v10 = vadd.f32 %v968_v7, %v2046_v14  ;;  %v1024_v24 = vsub.f32 1.0, %v2079_v51  ;;  %v1029_v7 = vsub.f32 1.0, %v2083_v55 }
 0x1fc   : > { %1665 = vtanh.f32 %v1000_v2  ;;  %1063 = vrot.lane.b32.xlu0 %v1656_v20, %s1701_s15 }
 0x1fd   : > { %v970_v30 = vpop.permute.xlu1 %969 }
 0x1fe   : > { %v1658_v53 = vpop.eup %1657  ;;  %v972_v39 = vpop.permute.xlu0 %971  ;;  %v1004_v16 = vadd.f32 %v970_v30, %v2051_v44 }
 0x1ff   : > { %v1660_v47 = vpop.eup %1659  ;;  %v1005_v0 = vadd.f32 %v972_v39, %v2055_v25  ;;  %1065 = vrot.lane.b32.xlu1 %v1658_v53, %s1701_s15 }
 0x200   : > { %1075 = vrot.lane.b32.xlu0 %v1660_v47, %s1701_s15  ;;  %v1030_v47 = vsub.f32 1.0, %v2086_v38 }
 0x201   : > { %1667 = vtanh.f32 %v1005_v0  ;;  %v974_v37 = vpop.permute.xlu1 %973 }
 0x202   : > { %v1662_v52 = vpop.eup %1661  ;;  %v1006_v12 = vadd.f32 %v974_v37, %v2061_v26  ;;  %v1136_v44 = vpop.permute.xlu0 %1135  ;;  %v1027_v37 = vsub.f32 1.0, %v2091_v46 }
 0x203   : > { %v1664_v15 = vpop.eup %1663  ;;  %1077 = vrot.lane.b32.xlu1 %v1662_v52, %s1701_s15  ;;  %v1183_v50 = vmul.f32 %v2071_v29, %v1136_v44 }
 0x204   : > { %1669 = vtanh.f32 %v1006_v12  ;;  %1071 = vrot.lane.b32.xlu0 %v1664_v15, %s1701_s15 }
 0x205   : > { %1671 = vtanh.f32 %v1003_v10  ;;  %v1138_v23 = vpop.permute.xlu1 %1137 }
 0x206   : > { %v1666_v25 = vpop.eup %1665  ;;  %1673 = vtanh.f32 %v1004_v16  ;;  %v1140_v27 = vpop.permute.xlu0 %1139  ;;  %v1184_v20 = vmul.f32 %v2079_v51, %v1138_v23 }
 0x207   : > { %1073 = vrot.lane.b32.xlu1 %v1666_v25, %s1701_s15  ;;  %v1185_v54 = vmul.f32 %v2069_v57, %v1140_v27  ;;  %v1028_v25 = vsub.f32 1.0, %v2096_v31 }
 0x209   : > { %v1142_v28 = vpop.permute.xlu1 %1141 }
 0x20a   : > { %v1144_v32 = vpop.permute.xlu0 %1143  ;;  %v1186_v61 = vmul.f32 %v2074_v3, %v1142_v28  ;;  %v1034_v28 = vsub.f32 1.0, %v2104_v6 }
 0x20b   : > { %v1668_v17 = vpop.eup %1667  ;;  %v1187_v15 = vmul.f32 %v2091_v46, %v1144_v32 }
 0x20c   : > { %1083 = vrot.lane.b32.xlu0 %v1668_v17, %s1701_s15 }
 0x20d   : > { %v1146_v33 = vpop.permute.xlu1 %1145 }
 0x20e   : > { %v1670_v14 = vpop.eup %1669  ;;  %v1148_v34 = vpop.permute.xlu0 %1147 }
 0x20f   : > { %v1672_v22 = vpop.eup %1671  ;;  %1085 = vrot.lane.b32.xlu1 %v1670_v14, %s1701_s15  ;;  %v1189_v53 = vmul.f32 %v2083_v55, %v1148_v34 }
 0x210   : > { %1079 = vrot.lane.b32.xlu0 %v1672_v22, %s1701_s15  ;;  %v1674_v26 = vpop.eup %1673  ;;  %v1033_v22 = vsub.f32 1.0, %v2099_v63 }
 0x211   : > { %v1150_v35 = vpop.permute.xlu1 %1149 }
 0x212   : > { %v2197_v40 = vpop.permute.xlu0 %1151  ;;  %v1190_v52 = vmul.f32 %v2086_v38, %v1150_v35  ;;  %v1031_v35 = vsub.f32 1.0, %v2107_v11 }
 0x213   : > { %1081 = vrot.lane.b32.xlu1 %v1674_v26, %s1701_s15  ;;  %v1188_v26 = vmul.f32 %v2096_v31, %v1146_v33  ;;  %v1191_v33 = vmul.f32 %v2107_v11, %v2197_v40 }
 0x214   : > { %1163 = vrot.lane.b32.xlu0 %v1896_v48, %s1700_s14  ;;  %v1025_v48 = vsub.f32 1.0, %v2069_v57 }
 0x215   : > { %v2199_v41 = vpop.permute.xlu1 %1153 }
 0x216   : > { %v1156_v42 = vpop.permute.xlu0 %1155 }
 0x217   : > { %1165 = vrot.lane.b32.xlu1 %v1898_v49, %s1700_s14  ;;  %v1193_v23 = vmul.f32 %v2099_v63, %v1156_v42 }
 0x219   : > { %v1158_v43 = vpop.permute.xlu1 %1157 }
 0x21a   : > { %v2201_v59 = vpop.permute.xlu0 %1159 }
 0x21d   : > { %v2204_v60 = vpop.permute.xlu1 %1161 }
 0x261   : > { %v1060_v49 = vpop.permute.xlu0 %1059 }
 0x262   : > { %v1105_v8 = vmul.f32 %v1060_v49, %v1025_v48  ;;  %v1194_v48 = vmul.f32 %v2104_v6, %v1158_v43  ;;  %v1035_v43 = vsub.f32 1.0, %v2115_v36 }
 0x264   : > { %v1201_v21 = vadd.f32 %v1185_v54, %v1105_v8  ;;  %v1032_v54 = vsub.f32 1.0, %v2112_v13 }
 0x265   : > { %v1062_v4 = vpop.permute.xlu1 %1061 }
 0x266   : > { %v1106_v58 = vmul.f32 %v1062_v4, %v1026_v1  ;;  %v1056_v62 = vpop.permute.xlu0 %1055  ;;  %1235 = vrot.lane.b32.xlu0 %v1201_v21, %s1701_s15  ;;  %v1192_v1 = vmul.f32 %v2112_v13, %v2199_v41  ;;  %v1037_v13 = vsub.f32 1.0, %v2123_v45 }
 0x267   : > { %v1103_v18 = vmul.f32 %v1056_v62, %v1023_v56  ;;  %v1036_v62 = vsub.f32 1.0, %v2120_v9 }
 0x268   : > { %v1202_v19 = vadd.f32 %v1186_v61, %v1106_v58  ;;  %v1195_v61 = vmul.f32 %v2115_v36, %v2201_v59 }
 0x269   : > { %v1199_v57 = vadd.f32 %v1183_v50, %v1103_v18  ;;  %v1058_v2 = vpop.permute.xlu1 %1057  ;;  %v1196_v18 = vmul.f32 %v2120_v9, %v2204_v60 }
 0x26a   : > { %v1104_v30 = vmul.f32 %v1058_v2, %v1024_v24  ;;  %1237 = vrot.lane.b32.xlu1 %v1202_v19, %s1701_s15  ;;  %v1068_v3 = vpop.permute.xlu0 %1067 }
 0x26b   : > { %1231 = vrot.lane.b32.xlu0 %v1199_v57, %s1701_s15  ;;  %v1109_v39 = vmul.f32 %v1068_v3, %v1029_v7  ;;  %v1038_v7 = vsub.f32 1.0, %v2128_v5 }
 0x26c   : > { %v1200_v29 = vadd.f32 %v1184_v20, %v1104_v30 }
 0x26d   : > { %v1205_v0 = vadd.f32 %v1189_v53, %v1109_v39  ;;  %v1070_v10 = vpop.permute.xlu1 %1069 }
 0x26e   : > { %v1110_v12 = vmul.f32 %v1070_v10, %v1030_v47  ;;  %1233 = vrot.lane.b32.xlu1 %v1200_v29, %s1701_s15  ;;  %v1064_v51 = vpop.permute.xlu0 %1063 }
 0x26f   : > { %v1107_v16 = vmul.f32 %v1064_v51, %v1027_v37  ;;  %1243 = vrot.lane.b32.xlu0 %v1205_v0, %s1701_s15 }
 0x270   : > { %v1206_v55 = vadd.f32 %v1190_v52, %v1110_v12 }
 0x271   : > { %v1203_v17 = vadd.f32 %v1187_v15, %v1107_v16  ;;  %v1066_v14 = vpop.permute.xlu1 %1065 }
 0x272   : > { %v1108_v44 = vmul.f32 %v1066_v14, %v1028_v25  ;;  %1245 = vrot.lane.b32.xlu1 %v1206_v55, %s1701_s15  ;;  %v1076_v38 = vpop.permute.xlu0 %1075 }
 0x273   : > { %v1113_v27 = vmul.f32 %v1076_v38, %v1033_v22  ;;  %1239 = vrot.lane.b32.xlu0 %v1203_v17, %s1701_s15 }
 0x274   : > { %v1204_v46 = vadd.f32 %v1188_v26, %v1108_v44 }
 0x275   : > { %v1209_v32 = vadd.f32 %v1193_v23, %v1113_v27  ;;  %v1078_v34 = vpop.permute.xlu1 %1077 }
 0x276   : > { %v1114_v49 = vmul.f32 %v1078_v34, %v1034_v28  ;;  %1241 = vrot.lane.b32.xlu1 %v1204_v46, %s1701_s15  ;;  %v1072_v31 = vpop.permute.xlu0 %1071 }
 0x277   : > { %v1111_v63 = vmul.f32 %v1072_v31, %v1031_v35  ;;  %1251 = vrot.lane.b32.xlu0 %v1209_v32, %s1701_s15 }
 0x278   : > { %v1210_v42 = vadd.f32 %v1194_v48, %v1114_v49 }
 0x279   : > { %v1207_v8 = vadd.f32 %v1191_v33, %v1111_v63  ;;  %v1074_v21 = vpop.permute.xlu1 %1073 }
 0x27a   : > { %v1112_v4 = vmul.f32 %v1074_v21, %v1032_v54  ;;  %1253 = vrot.lane.b32.xlu1 %v1210_v42, %s1701_s15 }
 0x27b   : > { %1247 = vrot.lane.b32.xlu0 %v1207_v8, %s1701_s15 }
 0x27c   : > { %v1208_v6 = vadd.f32 %v1192_v1, %v1112_v4 }
 0x27e   : > { %1249 = vrot.lane.b32.xlu1 %v1208_v6, %s1701_s15  ;;  %v1084_v11 = vpop.permute.xlu0 %1083 }
 0x27f   : > { %v1117_v57 = vmul.f32 %v1084_v11, %v1037_v13 }
 0x281   : > { %v1086_v40 = vpop.permute.xlu1 %1085 }
 0x282   : > { %v1080_v56 = vpop.permute.xlu0 %1079  ;;  %v1118_v30 = vmul.f32 %v1086_v40, %v1038_v7 }
 0x283   : > { %v1115_v58 = vmul.f32 %v1080_v56, %v1035_v43 }
 0x285   : > { %v1211_v41 = vadd.f32 %v1195_v61, %v1115_v58  ;;  %v1082_v50 = vpop.permute.xlu1 %1081 }
 0x286   : > { %v1116_v19 = vmul.f32 %v1082_v50, %v1036_v62  ;;  %v1164_v24 = vpop.permute.xlu0 %1163 }
 0x287   : > { %v1197_v2 = vmul.f32 %v2123_v45, %v1164_v24  ;;  %1255 = vrot.lane.b32.xlu0 %v1211_v41, %s1701_s15 }
 0x288   : > { %v1212_v36 = vadd.f32 %v1196_v18, %v1116_v19 }
 0x289   : > { %v1213_v59 = vadd.f32 %v1197_v2, %v1117_v57  ;;  %v1166_v20 = vpop.permute.xlu1 %1165 }
 0x28a   : > { %v1198_v3 = vmul.f32 %v2128_v5, %v1166_v20  ;;  %1257 = vrot.lane.b32.xlu1 %v1212_v36, %s1701_s15 }
 0x28b   : > { %1259 = vrot.lane.b32.xlu0 %v1213_v59, %s1701_s15 }
 0x28c   : > { %v1214_v9 = vadd.f32 %v1198_v3, %v1118_v30 }
 0x28e   : > { %1261 = vrot.lane.b32.xlu1 %v1214_v9, %s1701_s15 }
 0x2d8   : > { %v1236_v60 = vpop.permute.xlu0 %1235 }
 0x2d9   : > { %1281 = vst.msk [vmem:[#allocation2 + $0x10] sm:$0xff] %vm613_vm1, %v1236_v60  ;;  %1301 = vst.msk [vmem:[%s2353_s6 + $0x10] sm:$0xff] (!%p1464_p6), %vm613_vm1, %v1236_v60 }
 0x2dc   : > { %v1238_v45 = vpop.permute.xlu1 %1237 }
 0x2dd   : > { %1282 = vst.msk [vmem:[#allocation2 + $0x18] sm:$0xff] %vm613_vm1, %v1238_v45  ;;  %v1232_v53 = vpop.permute.xlu0 %1231  ;;  %1302 = vst.msk [vmem:[%s2353_s6 + $0x18] sm:$0xff] (!%p1464_p6), %vm613_vm1, %v1238_v45 }
 0x2de   : > { %1279 = vst.msk [vmem:[#allocation2] sm:$0xff] %vm613_vm1, %v1232_v53  ;;  %1299 = vst.msk [vmem:[%s2353_s6] sm:$0xff] (!%p1464_p6), %vm613_vm1, %v1232_v53 }
 0x2e0   : > { %v1234_v39 = vpop.permute.xlu1 %1233 }
 0x2e1   : > { %1280 = vst.msk [vmem:[#allocation2 + $0x8] sm:$0xff] %vm613_vm1, %v1234_v39  ;;  %v1244_v5 = vpop.permute.xlu0 %1243  ;;  %1300 = vst.msk [vmem:[%s2353_s6 + $0x8] sm:$0xff] (!%p1464_p6), %vm613_vm1, %v1234_v39 }
 0x2e2   : > { %1285 = vst.msk [vmem:[#allocation2 + $0x30] sm:$0xff] %vm613_vm1, %v1244_v5  ;;  %1305 = vst.msk [vmem:[%s2353_s6 + $0x30] sm:$0xff] (!%p1464_p6), %vm613_vm1, %v1244_v5 }
 0x2e4   : > { %v1246_v29 = vpop.permute.xlu1 %1245 }
 0x2e5   : > { %1286 = vst.msk [vmem:[#allocation2 + $0x38] sm:$0xff] %vm613_vm1, %v1246_v29  ;;  %v1240_v47 = vpop.permute.xlu0 %1239  ;;  %1306 = vst.msk [vmem:[%s2353_s6 + $0x38] sm:$0xff] (!%p1464_p6), %vm613_vm1, %v1246_v29 }
 0x2e6   : > { %1283 = vst.msk [vmem:[#allocation2 + $0x20] sm:$0xff] %vm613_vm1, %v1240_v47  ;;  %1303 = vst.msk [vmem:[%s2353_s6 + $0x20] sm:$0xff] (!%p1464_p6), %vm613_vm1, %v1240_v47 }
 0x2e8   : > { %v1242_v0 = vpop.permute.xlu1 %1241 }
 0x2e9   : > { %1284 = vst.msk [vmem:[#allocation2 + $0x28] sm:$0xff] %vm613_vm1, %v1242_v0  ;;  %v1252_v10 = vpop.permute.xlu0 %1251  ;;  %1304 = vst.msk [vmem:[%s2353_s6 + $0x28] sm:$0xff] (!%p1464_p6), %vm613_vm1, %v1242_v0 }
 0x2ea   : > { %1289 = vst.msk [vmem:[#allocation2 + $0x50] sm:$0xff] %vm613_vm1, %v1252_v10  ;;  %1309 = vst.msk [vmem:[%s2353_s6 + $0x50] sm:$0xff] (!%p1464_p6), %vm613_vm1, %v1252_v10 }
 0x2ec   : > { %v1254_v37 = vpop.permute.xlu1 %1253 }
 0x2ed   : > { %1290 = vst.msk [vmem:[#allocation2 + $0x58] sm:$0xff] %vm613_vm1, %v1254_v37  ;;  %v1248_v52 = vpop.permute.xlu0 %1247  ;;  %1310 = vst.msk [vmem:[%s2353_s6 + $0x58] sm:$0xff] (!%p1464_p6), %vm613_vm1, %v1254_v37 }
 0x2ee   : > { %1287 = vst.msk [vmem:[#allocation2 + $0x40] sm:$0xff] %vm613_vm1, %v1248_v52  ;;  %1307 = vst.msk [vmem:[%s2353_s6 + $0x40] sm:$0xff] (!%p1464_p6), %vm613_vm1, %v1248_v52 }
 0x2f0   : > { %v1250_v12 = vpop.permute.xlu1 %1249 }
 0x2f1   : > { %1288 = vst.msk [vmem:[#allocation2 + $0x48] sm:$0xff] %vm613_vm1, %v1250_v12  ;;  %1308 = vst.msk [vmem:[%s2353_s6 + $0x48] sm:$0xff] (!%p1464_p6), %vm613_vm1, %v1250_v12 }
 0x2f9   : > { %v1256_v51 = vpop.permute.xlu0 %1255 }
 0x2fa   : > { %1291 = vst.msk [vmem:[#allocation2 + $0x60] sm:$0xff] %vm613_vm1, %v1256_v51  ;;  %1311 = vst.msk [vmem:[%s2353_s6 + $0x60] sm:$0xff] (!%p1464_p6), %vm613_vm1, %v1256_v51 }
 0x2fb   : > { %1298 = sbr.rel (%p1464_p6) target bundleno = 770 (0x302), region = 52 }
 0x2fc   : > { %v1258_v15 = vpop.permute.xlu1 %1257 }
 0x2fd   : > { %1292 = vst.msk [vmem:[#allocation2 + $0x68] sm:$0xff] %vm613_vm1, %v1258_v15  ;;  %v1260_v16 = vpop.permute.xlu0 %1259  ;;  %1312 = vst.msk [vmem:[%s2353_s6 + $0x68] sm:$0xff] (!%p1464_p6), %vm613_vm1, %v1258_v15 }
 0x2fe   : > { %1293 = vst.msk [vmem:[#allocation2 + $0x70] sm:$0xff] %vm613_vm1, %v1260_v16  ;;  %1313 = vst.msk [vmem:[%s2353_s6 + $0x70] sm:$0xff] (!%p1464_p6), %vm613_vm1, %v1260_v16 }
 0x300   : > { %v1262_v55 = vpop.permute.xlu1 %1261 }
 0x301   : > { %1294 = vst.msk [vmem:[#allocation2 + $0x78] sm:$0xff] %vm613_vm1, %v1262_v55  ;;  %1314 = vst.msk [vmem:[%s2353_s6 + $0x78] sm:$0xff] (!%p1464_p6), %vm613_vm1, %v1262_v55 }
 0x302 PF: > { %s16_s23 = sadd.s32 1, %s1697_s23   ;;  %s2354_s21 = smov %s1693_s22 }
 0x303   : > { %p13_p7 = scmp.ge.s32.totalorder %s16_s23, 4   ;;  %s2355_s22 = smov %s2357_s24 }
 0x305   :  { %15 = sbr.rel (!%p13_p7) target bundleno = 2 (0x2), region = 89 }

</bundles_post_ra>
